<compile_context>
chip_gen: v7x
topology: tpu7x:2x2x1
jax: 0.10.0
libtpu: 0.0.40
codegen_flags: <defaults>
</compile_context>

<pallas_src>
import math
import functools

import jax
import jax.numpy as jnp
from jax.experimental import pallas as pl
from jax.experimental.pallas import tpu as pltpu


def _self_attention_kernel(q_ref, k_ref, v_ref, bias_ref,
                           wq_ref, bq_ref, wk_ref, bk_ref,
                           wv_ref, bv_ref, wf_ref, bf_ref,
                           o_ref, ctx_ref, *, n_heads):
    # q_ref: (1, tq, H) query tile;  k_ref/v_ref: (1, S, H) full key/value;
    # bias_ref: (1, tq, S) additive mask bias (bf16, -1e30 where masked).
    xq = q_ref[0].astype(jnp.bfloat16)          # (tq, H)
    xk = k_ref[0].astype(jnp.bfloat16)          # (S,  H)
    xv = v_ref[0].astype(jnp.bfloat16)          # (S,  H)
    bias = bias_ref[0].astype(jnp.float32)      # (tq, S)

    H = xq.shape[-1]
    d = H // n_heads

    # Projections: bf16 operands on the MXU, f32 accumulation, f32 bias add.
    # (1/scale is already folded into wq_ref / bq_ref by the wrapper.)
    Q = (jnp.dot(xq, wq_ref[...], preferred_element_type=jnp.float32)
         + bq_ref[...]).astype(jnp.bfloat16)    # (tq, H), pre-scaled
    K = (jnp.dot(xk, wk_ref[...], preferred_element_type=jnp.float32)
         + bk_ref[...]).astype(jnp.bfloat16)    # (S,  H)
    V = (jnp.dot(xv, wv_ref[...], preferred_element_type=jnp.float32)
         + bv_ref[...]).astype(jnp.bfloat16)    # (S,  H)

    # Per-head attention via static lane column slices (no reshape/transpose).
    for h in range(n_heads):
        sl = slice(h * d, (h + 1) * d)
        qh = Q[:, sl]                           # (tq, d)
        kh = K[:, sl]                           # (S,  d)
        vh = V[:, sl]                           # (S,  d)

        # energy = (xq W_q / scale) @ (xk W_k)^T + mask_bias
        energy = jnp.dot(qh, kh.T, preferred_element_type=jnp.float32)  # (tq, S)
        energy = energy + bias

        # Softmax (f32).  Masked entries underflow to exactly 0.
        e_max = jnp.max(energy, axis=-1, keepdims=True)
        e = jnp.exp(energy - e_max)
        attn = e * pl.reciprocal(jnp.sum(e, axis=-1, keepdims=True), approx=True)

        # context for this head -> write into its column slice of the scratch.
        ctx_h = jnp.dot(attn.astype(jnp.bfloat16), vh,
                        preferred_element_type=jnp.float32)             # (tq, d)
        ctx_ref[:, sl] = ctx_h

    # Final projection.
    out = (jnp.dot(ctx_ref[...].astype(jnp.bfloat16), wf_ref[...],
                   preferred_element_type=jnp.float32) + bf_ref[...])
    o_ref[0] = out.astype(o_ref.dtype)


def prepare_params(params, *, n_heads):
    """One-time weight prep (hoisted out of the hot path): transpose to (in, out),
    fold 1/sqrt(d) into w_q/b_q, cast weights to bf16, biases to (1, H) f32."""
    H = params['w_q'].shape[0]
    d = H // n_heads
    scale = math.sqrt(d)
    f32 = jnp.float32
    return dict(
        wq=(params['w_q'].T / scale).astype(jnp.bfloat16),
        bq=(params['b_q'] / scale).reshape(1, H).astype(f32),
        wk=params['w_k'].T.astype(jnp.bfloat16),
        bk=params['b_k'].reshape(1, H).astype(f32),
        wv=params['w_v'].T.astype(jnp.bfloat16),
        bv=params['b_v'].reshape(1, H).astype(f32),
        wf=params['fc_w'].T.astype(jnp.bfloat16),
        bf=params['fc_b'].reshape(1, H).astype(f32),
    )


def self_attention(query, key, value, mask, prepared, *, n_heads, q_tile=None):
    """query/key/value: [B,S,H]; mask: [B,S,S] (nonzero = keep).
    prepared: output of prepare_params()."""
    B, S, H = query.shape

    # Query tile: largest MXU-friendly multiple of 8 that divides S (<=256);
    # fall back to the full sequence.
    if q_tile is None:
        q_tile = S
        for cand in (256, 128, 64, 32, 16, 8):
            if S % cand == 0:
                q_tile = cand
                break
    n_q = S // q_tile

    # Additive mask bias (bf16): 0 where kept, -1e30 where masked.
    bias = jnp.where(mask == 0, jnp.float32(-1e30),
                     jnp.float32(0.0)).astype(jnp.bfloat16)

    kernel = functools.partial(_self_attention_kernel, n_heads=n_heads)

    q_map = lambda b, qi: (b, qi, 0)     # per-batch, per-q-tile
    kv_map = lambda b, qi: (b, 0, 0)     # per-batch, full sequence
    w_map = lambda b, qi: (0, 0)         # constant -> DMA'd once

    return pl.pallas_call(
        kernel,
        out_shape=jax.ShapeDtypeStruct((B, S, H), query.dtype),
        grid_spec=pltpu.PrefetchScalarGridSpec(
            num_scalar_prefetch=0,
            grid=(B, n_q),
            in_specs=[
                pl.BlockSpec((1, q_tile, H), q_map),    # query tile
                pl.BlockSpec((1, S, H), kv_map),        # key
                pl.BlockSpec((1, S, H), kv_map),        # value
                pl.BlockSpec((1, q_tile, S), q_map),    # additive mask bias
                pl.BlockSpec((H, H), w_map),            # w_q (pre-scaled, bf16)
                pl.BlockSpec((1, H), w_map),            # b_q (pre-scaled)
                pl.BlockSpec((H, H), w_map),            # w_k
                pl.BlockSpec((1, H), w_map),            # b_k
                pl.BlockSpec((H, H), w_map),            # w_v
                pl.BlockSpec((1, H), w_map),            # b_v
                pl.BlockSpec((H, H), w_map),            # fc_w
                pl.BlockSpec((1, H), w_map),            # fc_b
            ],
            out_specs=pl.BlockSpec((1, q_tile, H), q_map),
            scratch_shapes=[pltpu.VMEM((q_tile, H), jnp.float32)],
        ),
        compiler_params=pltpu.CompilerParams(
            dimension_semantics=("parallel", "parallel"),
            vmem_limit_bytes=48 * 1024 * 1024),
    )(query, key, value, bias,
      prepared['wq'], prepared['bq'], prepared['wk'], prepared['bk'],
      prepared['wv'], prepared['bv'], prepared['wf'], prepared['bf'])


def _reference(query, key, value, mask, params, *, n_heads):
    """Pure-JAX f32 reference reproducing the PyTorch forward (eval mode)."""
    B, S, H = query.shape
    d = H // n_heads
    scale = math.sqrt(d)

    def lin(x, w, b):
        return x @ w.T + b

    Q = lin(query, params['w_q'], params['b_q'])
    K = lin(key, params['w_k'], params['b_k'])
    V = lin(value, params['w_v'], params['b_v'])

    def split(x):
        return x.reshape(B, S, n_heads, d).transpose(0, 2, 1, 3)

    Qh, Kh, Vh = split(Q), split(K), split(V)
    energy = jnp.einsum('bhqd,bhkd->bhqk', Qh, Kh) / scale
    energy = jnp.where(mask[:, None, :, :] == 0, -jnp.inf, energy)
    attn = jax.nn.softmax(energy, axis=-1)
    x = jnp.einsum('bhqk,bhkd->bhqd', attn, Vh)
    x = x.transpose(0, 2, 1, 3).reshape(B, S, H)
    return lin(x, params['fc_w'], params['fc_b'])


if __name__ == "__main__":
    B, S, H, n_heads = 2, 8, 32, 4

    key0 = jax.random.PRNGKey(0)
    ks = jax.random.split(key0, 12)

    def init_linear(kw, kb, fan_in, fan_out):
        bound = 1.0 / math.sqrt(fan_in)
        w = jax.random.uniform(kw, (fan_out, fan_in), jnp.float32, -bound, bound)
        b = jax.random.uniform(kb, (fan_out,), jnp.float32, -bound, bound)
        return w, b

    w_q, b_q = init_linear(ks[0], ks[1], H, H)
    w_k, b_k = init_linear(ks[2], ks[3], H, H)
    w_v, b_v = init_linear(ks[4], ks[5], H, H)
    fc_w, fc_b = init_linear(ks[6], ks[7], H, H)
    params = dict(w_q=w_q, b_q=b_q, w_k=w_k, b_k=b_k,
                  w_v=w_v, b_v=b_v, fc_w=fc_w, fc_b=fc_b)

    query = jax.random.normal(ks[8], (B, S, H), jnp.float32)
    key_in = jax.random.normal(ks[9], (B, S, H), jnp.float32)
    value = jax.random.normal(ks[10], (B, S, H), jnp.float32)

    # Causal mask (lower triangular), shape [B, S, S]; 1 = keep, 0 = mask out.
    mask = jnp.broadcast_to(jnp.tril(jnp.ones((S, S), jnp.float32)), (B, S, S))

    prepared = prepare_params(params, n_heads=n_heads)   # one-time prep
    out = self_attention(query, key_in, value, mask, prepared, n_heads=n_heads)
    out = jax.block_until_ready(out)

    ref = _reference(query, key_in, value, mask, params, n_heads=n_heads)
    assert out.shape == (B, S, H)
    # bf16 MXU operands -> loosened tolerance vs f32 reference (per review).
    assert jnp.allclose(out, ref, atol=3e-2, rtol=3e-2), \
        f"max err {jnp.max(jnp.abs(out - ref))}"

    print("KERNEL_OK")
</pallas_src>

<mosaic_0001>
module attributes {stable_mosaic.version = 11 : i64} {
  func.func @_self_attention_kernel(%arg0: i32, %arg1: i32, %arg2: memref<1x8x32xf32, #tpu.memory_space<vmem>>, %arg3: memref<1x8x32xf32, #tpu.memory_space<vmem>>, %arg4: memref<1x8x32xf32, #tpu.memory_space<vmem>>, %arg5: memref<1x8x8xbf16, #tpu.memory_space<vmem>>, %arg6: memref<32x32xbf16, #tpu.memory_space<vmem>>, %arg7: memref<1x32xf32, #tpu.memory_space<vmem>>, %arg8: memref<32x32xbf16, #tpu.memory_space<vmem>>, %arg9: memref<1x32xf32, #tpu.memory_space<vmem>>, %arg10: memref<32x32xbf16, #tpu.memory_space<vmem>>, %arg11: memref<1x32xf32, #tpu.memory_space<vmem>>, %arg12: memref<32x32xbf16, #tpu.memory_space<vmem>>, %arg13: memref<1x32xf32, #tpu.memory_space<vmem>>, %arg14: memref<1x8x32xf32, #tpu.memory_space<vmem>>, %arg15: memref<8x32xf32, #tpu.memory_space<vmem>>) attributes {dimension_semantics = [#tpu.dimension_semantics<parallel>, #tpu.dimension_semantics<parallel>], iteration_bounds = array<i64: 2, 1>, scalar_prefetch = 0 : i64, scratch_operands = 1 : i64, tpu.core_type = #tpu.core_type<tc>, window_params = [{transform_indices = @transform_0, window_bounds = array<i64: 1, 8, 32>}, {transform_indices = @transform_1, window_bounds = array<i64: 1, 8, 32>}, {transform_indices = @transform_2, window_bounds = array<i64: 1, 8, 32>}, {transform_indices = @transform_3, window_bounds = array<i64: 1, 8, 8>}, {pipeline_mode = #tpu.pipeline_mode<synchronous>, transform_indices = @transform_4, window_bounds = array<i64: 32, 32>}, {pipeline_mode = #tpu.pipeline_mode<synchronous>, transform_indices = @transform_5, window_bounds = array<i64: 1, 32>}, {pipeline_mode = #tpu.pipeline_mode<synchronous>, transform_indices = @transform_6, window_bounds = array<i64: 32, 32>}, {pipeline_mode = #tpu.pipeline_mode<synchronous>, transform_indices = @transform_7, window_bounds = array<i64: 1, 32>}, {pipeline_mode = #tpu.pipeline_mode<synchronous>, transform_indices = @transform_8, window_bounds = array<i64: 32, 32>}, {pipeline_mode = #tpu.pipeline_mode<synchronous>, transform_indices = @transform_9, window_bounds = array<i64: 1, 32>}, {pipeline_mode = #tpu.pipeline_mode<synchronous>, transform_indices = @transform_10, window_bounds = array<i64: 32, 32>}, {pipeline_mode = #tpu.pipeline_mode<synchronous>, transform_indices = @transform_11, window_bounds = array<i64: 1, 32>}, {transform_indices = @transform_12, window_bounds = array<i64: 1, 8, 32>}]} {
    %c0 = arith.constant 0 : index
    %c0_0 = arith.constant 0 : index
    %c0_1 = arith.constant 0 : index
    %0 = vector.load %arg2[%c0, %c0_0, %c0_1] : memref<1x8x32xf32, #tpu.memory_space<vmem>>, vector<1x8x32xf32>
    %1 = vector.shape_cast %0 : vector<1x8x32xf32> to vector<8x32xf32>
    %2 = arith.truncf %1 : vector<8x32xf32> to vector<8x32xbf16>
    %c0_2 = arith.constant 0 : index
    %c0_3 = arith.constant 0 : index
    %c0_4 = arith.constant 0 : index
    %3 = vector.load %arg3[%c0_2, %c0_3, %c0_4] : memref<1x8x32xf32, #tpu.memory_space<vmem>>, vector<1x8x32xf32>
    %4 = vector.shape_cast %3 : vector<1x8x32xf32> to vector<8x32xf32>
    %5 = arith.truncf %4 : vector<8x32xf32> to vector<8x32xbf16>
    %c0_5 = arith.constant 0 : index
    %c0_6 = arith.constant 0 : index
    %c0_7 = arith.constant 0 : index
    %6 = vector.load %arg4[%c0_5, %c0_6, %c0_7] : memref<1x8x32xf32, #tpu.memory_space<vmem>>, vector<1x8x32xf32>
    %7 = vector.shape_cast %6 : vector<1x8x32xf32> to vector<8x32xf32>
    %8 = arith.truncf %7 : vector<8x32xf32> to vector<8x32xbf16>
    %c0_8 = arith.constant 0 : index
    %c0_9 = arith.constant 0 : index
    %c0_10 = arith.constant 0 : index
    %9 = vector.load %arg5[%c0_8, %c0_9, %c0_10] : memref<1x8x8xbf16, #tpu.memory_space<vmem>>, vector<1x8x8xbf16>
    %10 = vector.shape_cast %9 : vector<1x8x8xbf16> to vector<8x8xbf16>
    %11 = arith.extf %10 : vector<8x8xbf16> to vector<8x8xf32>
    %c0_11 = arith.constant 0 : index
    %c0_12 = arith.constant 0 : index
    %12 = vector.load %arg6[%c0_11, %c0_12] : memref<32x32xbf16, #tpu.memory_space<vmem>>, vector<32x32xbf16>
    %cst = arith.constant dense<0.000000e+00> : vector<8x32xf32>
    %13 = tpu.matmul %2, %12, %cst {dimension_numbers = #tpu.dot_dimension_numbers<[1], [0], [0], [1], [0, 0, 1, 1], [], []>} : vector<8x32xbf16>, vector<32x32xbf16>, vector<8x32xf32> -> vector<8x32xf32>
    %c0_13 = arith.constant 0 : index
    %c0_14 = arith.constant 0 : index
    %14 = vector.load %arg7[%c0_13, %c0_14] : memref<1x32xf32, #tpu.memory_space<vmem>>, vector<1x32xf32>
    %15 = vector.broadcast %14 : vector<1x32xf32> to vector<8x32xf32>
    %16 = arith.addf %13, %15 : vector<8x32xf32>
    %17 = arith.truncf %16 : vector<8x32xf32> to vector<8x32xbf16>
    %c0_15 = arith.constant 0 : index
    %c0_16 = arith.constant 0 : index
    %18 = vector.load %arg8[%c0_15, %c0_16] : memref<32x32xbf16, #tpu.memory_space<vmem>>, vector<32x32xbf16>
    %cst_17 = arith.constant dense<0.000000e+00> : vector<8x32xf32>
    %19 = tpu.matmul %5, %18, %cst_17 {dimension_numbers = #tpu.dot_dimension_numbers<[1], [0], [0], [1], [0, 0, 1, 1], [], []>} : vector<8x32xbf16>, vector<32x32xbf16>, vector<8x32xf32> -> vector<8x32xf32>
    %c0_18 = arith.constant 0 : index
    %c0_19 = arith.constant 0 : index
    %20 = vector.load %arg9[%c0_18, %c0_19] : memref<1x32xf32, #tpu.memory_space<vmem>>, vector<1x32xf32>
    %21 = vector.broadcast %20 : vector<1x32xf32> to vector<8x32xf32>
    %22 = arith.addf %19, %21 : vector<8x32xf32>
    %23 = arith.truncf %22 : vector<8x32xf32> to vector<8x32xbf16>
    %c0_20 = arith.constant 0 : index
    %c0_21 = arith.constant 0 : index
    %24 = vector.load %arg10[%c0_20, %c0_21] : memref<32x32xbf16, #tpu.memory_space<vmem>>, vector<32x32xbf16>
    %cst_22 = arith.constant dense<0.000000e+00> : vector<8x32xf32>
    %25 = tpu.matmul %8, %24, %cst_22 {dimension_numbers = #tpu.dot_dimension_numbers<[1], [0], [0], [1], [0, 0, 1, 1], [], []>} : vector<8x32xbf16>, vector<32x32xbf16>, vector<8x32xf32> -> vector<8x32xf32>
    %c0_23 = arith.constant 0 : index
    %c0_24 = arith.constant 0 : index
    %26 = vector.load %arg11[%c0_23, %c0_24] : memref<1x32xf32, #tpu.memory_space<vmem>>, vector<1x32xf32>
    %27 = vector.broadcast %26 : vector<1x32xf32> to vector<8x32xf32>
    %28 = arith.addf %25, %27 : vector<8x32xf32>
    %29 = arith.truncf %28 : vector<8x32xf32> to vector<8x32xbf16>
    %30 = vector.extract_strided_slice %17 {offsets = [0, 0], sizes = [8, 8], strides = [1, 1]} : vector<8x32xbf16> to vector<8x8xbf16>
    %31 = vector.extract_strided_slice %23 {offsets = [0, 0], sizes = [8, 8], strides = [1, 1]} : vector<8x32xbf16> to vector<8x8xbf16>
    %32 = vector.extract_strided_slice %29 {offsets = [0, 0], sizes = [8, 8], strides = [1, 1]} : vector<8x32xbf16> to vector<8x8xbf16>
    %33 = tpu.transpose %31, [1, 0] : vector<8x8xbf16> -> vector<8x8xbf16>
    %cst_25 = arith.constant dense<0.000000e+00> : vector<8x8xf32>
    %34 = tpu.matmul %30, %33, %cst_25 {dimension_numbers = #tpu.dot_dimension_numbers<[1], [0], [0], [1], [0, 0, 1, 1], [], []>} : vector<8x8xbf16>, vector<8x8xbf16>, vector<8x8xf32> -> vector<8x8xf32>
    %35 = arith.addf %34, %11 : vector<8x8xf32>
    %cst_26 = arith.constant dense<0xFF800000> : vector<8xf32>
    %36 = vector.multi_reduction <maximumf>, %35, %cst_26 [1] : vector<8x8xf32> to vector<8xf32>
    %37 = vector.shape_cast %36 : vector<8xf32> to vector<8x1xf32>
    %38 = vector.broadcast %37 : vector<8x1xf32> to vector<8x8xf32>
    %39 = arith.subf %35, %38 : vector<8x8xf32>
    %40 = math.exp %39 : vector<8x8xf32>
    %cst_27 = arith.constant dense<0.000000e+00> : vector<8xf32>
    %41 = vector.multi_reduction <add>, %40, %cst_27 [1] : vector<8x8xf32> to vector<8xf32>
    %42 = vector.shape_cast %41 : vector<8xf32> to vector<8x1xf32>
    %43 = tpu.reciprocal %42 {approx = true} : vector<8x1xf32> -> vector<8x1xf32>
    %44 = vector.broadcast %43 : vector<8x1xf32> to vector<8x8xf32>
    %45 = arith.mulf %40, %44 : vector<8x8xf32>
    %46 = arith.truncf %45 : vector<8x8xf32> to vector<8x8xbf16>
    %cst_28 = arith.constant dense<0.000000e+00> : vector<8x8xf32>
    %47 = tpu.matmul %46, %32, %cst_28 {dimension_numbers = #tpu.dot_dimension_numbers<[1], [0], [0], [1], [0, 0, 1, 1], [], []>} : vector<8x8xbf16>, vector<8x8xbf16>, vector<8x8xf32> -> vector<8x8xf32>
    %c0_29 = arith.constant 0 : index
    %c0_30 = arith.constant 0 : index
    %48 = vector.load %arg15[%c0_29, %c0_30] : memref<8x32xf32, #tpu.memory_space<vmem>>, vector<8x8xf32>
    tpu.vector_store %arg15[%c0_29, %c0_30], %47 {strides = array<i32>} : memref<8x32xf32, #tpu.memory_space<vmem>>, vector<8x8xf32>,
    %49 = vector.extract_strided_slice %17 {offsets = [0, 8], sizes = [8, 8], strides = [1, 1]} : vector<8x32xbf16> to vector<8x8xbf16>
    %50 = vector.extract_strided_slice %23 {offsets = [0, 8], sizes = [8, 8], strides = [1, 1]} : vector<8x32xbf16> to vector<8x8xbf16>
    %51 = vector.extract_strided_slice %29 {offsets = [0, 8], sizes = [8, 8], strides = [1, 1]} : vector<8x32xbf16> to vector<8x8xbf16>
    %52 = tpu.transpose %50, [1, 0] : vector<8x8xbf16> -> vector<8x8xbf16>
    %cst_31 = arith.constant dense<0.000000e+00> : vector<8x8xf32>
    %53 = tpu.matmul %49, %52, %cst_31 {dimension_numbers = #tpu.dot_dimension_numbers<[1], [0], [0], [1], [0, 0, 1, 1], [], []>} : vector<8x8xbf16>, vector<8x8xbf16>, vector<8x8xf32> -> vector<8x8xf32>
    %54 = arith.addf %53, %11 : vector<8x8xf32>
    %cst_32 = arith.constant dense<0xFF800000> : vector<8xf32>
    %55 = vector.multi_reduction <maximumf>, %54, %cst_32 [1] : vector<8x8xf32> to vector<8xf32>
    %56 = vector.shape_cast %55 : vector<8xf32> to vector<8x1xf32>
    %57 = vector.broadcast %56 : vector<8x1xf32> to vector<8x8xf32>
    %58 = arith.subf %54, %57 : vector<8x8xf32>
    %59 = math.exp %58 : vector<8x8xf32>
    %cst_33 = arith.constant dense<0.000000e+00> : vector<8xf32>
    %60 = vector.multi_reduction <add>, %59, %cst_33 [1] : vector<8x8xf32> to vector<8xf32>
    %61 = vector.shape_cast %60 : vector<8xf32> to vector<8x1xf32>
    %62 = tpu.reciprocal %61 {approx = true} : vector<8x1xf32> -> vector<8x1xf32>
    %63 = vector.broadcast %62 : vector<8x1xf32> to vector<8x8xf32>
    %64 = arith.mulf %59, %63 : vector<8x8xf32>
    %65 = arith.truncf %64 : vector<8x8xf32> to vector<8x8xbf16>
    %cst_34 = arith.constant dense<0.000000e+00> : vector<8x8xf32>
    %66 = tpu.matmul %65, %51, %cst_34 {dimension_numbers = #tpu.dot_dimension_numbers<[1], [0], [0], [1], [0, 0, 1, 1], [], []>} : vector<8x8xbf16>, vector<8x8xbf16>, vector<8x8xf32> -> vector<8x8xf32>
    %c0_35 = arith.constant 0 : index
    %c8 = arith.constant 8 : index
    %67 = vector.load %arg15[%c0_35, %c8] : memref<8x32xf32, #tpu.memory_space<vmem>>, vector<8x8xf32>
    tpu.vector_store %arg15[%c0_35, %c8], %66 {strides = array<i32>} : memref<8x32xf32, #tpu.memory_space<vmem>>, vector<8x8xf32>,
    %68 = vector.extract_strided_slice %17 {offsets = [0, 16], sizes = [8, 8], strides = [1, 1]} : vector<8x32xbf16> to vector<8x8xbf16>
    %69 = vector.extract_strided_slice %23 {offsets = [0, 16], sizes = [8, 8], strides = [1, 1]} : vector<8x32xbf16> to vector<8x8xbf16>
    %70 = vector.extract_strided_slice %29 {offsets = [0, 16], sizes = [8, 8], strides = [1, 1]} : vector<8x32xbf16> to vector<8x8xbf16>
    %71 = tpu.transpose %69, [1, 0] : vector<8x8xbf16> -> vector<8x8xbf16>
    %cst_36 = arith.constant dense<0.000000e+00> : vector<8x8xf32>
    %72 = tpu.matmul %68, %71, %cst_36 {dimension_numbers = #tpu.dot_dimension_numbers<[1], [0], [0], [1], [0, 0, 1, 1], [], []>} : vector<8x8xbf16>, vector<8x8xbf16>, vector<8x8xf32> -> vector<8x8xf32>
    %73 = arith.addf %72, %11 : vector<8x8xf32>
    %cst_37 = arith.constant dense<0xFF800000> : vector<8xf32>
    %74 = vector.multi_reduction <maximumf>, %73, %cst_37 [1] : vector<8x8xf32> to vector<8xf32>
    %75 = vector.shape_cast %74 : vector<8xf32> to vector<8x1xf32>
    %76 = vector.broadcast %75 : vector<8x1xf32> to vector<8x8xf32>
    %77 = arith.subf %73, %76 : vector<8x8xf32>
    %78 = math.exp %77 : vector<8x8xf32>
    %cst_38 = arith.constant dense<0.000000e+00> : vector<8xf32>
    %79 = vector.multi_reduction <add>, %78, %cst_38 [1] : vector<8x8xf32> to vector<8xf32>
    %80 = vector.shape_cast %79 : vector<8xf32> to vector<8x1xf32>
    %81 = tpu.reciprocal %80 {approx = true} : vector<8x1xf32> -> vector<8x1xf32>
    %82 = vector.broadcast %81 : vector<8x1xf32> to vector<8x8xf32>
    %83 = arith.mulf %78, %82 : vector<8x8xf32>
    %84 = arith.truncf %83 : vector<8x8xf32> to vector<8x8xbf16>
    %cst_39 = arith.constant dense<0.000000e+00> : vector<8x8xf32>
    %85 = tpu.matmul %84, %70, %cst_39 {dimension_numbers = #tpu.dot_dimension_numbers<[1], [0], [0], [1], [0, 0, 1, 1], [], []>} : vector<8x8xbf16>, vector<8x8xbf16>, vector<8x8xf32> -> vector<8x8xf32>
    %c0_40 = arith.constant 0 : index
    %c16 = arith.constant 16 : index
    %86 = vector.load %arg15[%c0_40, %c16] : memref<8x32xf32, #tpu.memory_space<vmem>>, vector<8x8xf32>
    tpu.vector_store %arg15[%c0_40, %c16], %85 {strides = array<i32>} : memref<8x32xf32, #tpu.memory_space<vmem>>, vector<8x8xf32>,
    %87 = vector.extract_strided_slice %17 {offsets = [0, 24], sizes = [8, 8], strides = [1, 1]} : vector<8x32xbf16> to vector<8x8xbf16>
    %88 = vector.extract_strided_slice %23 {offsets = [0, 24], sizes = [8, 8], strides = [1, 1]} : vector<8x32xbf16> to vector<8x8xbf16>
    %89 = vector.extract_strided_slice %29 {offsets = [0, 24], sizes = [8, 8], strides = [1, 1]} : vector<8x32xbf16> to vector<8x8xbf16>
    %90 = tpu.transpose %88, [1, 0] : vector<8x8xbf16> -> vector<8x8xbf16>
    %cst_41 = arith.constant dense<0.000000e+00> : vector<8x8xf32>
    %91 = tpu.matmul %87, %90, %cst_41 {dimension_numbers = #tpu.dot_dimension_numbers<[1], [0], [0], [1], [0, 0, 1, 1], [], []>} : vector<8x8xbf16>, vector<8x8xbf16>, vector<8x8xf32> -> vector<8x8xf32>
    %92 = arith.addf %91, %11 : vector<8x8xf32>
    %cst_42 = arith.constant dense<0xFF800000> : vector<8xf32>
    %93 = vector.multi_reduction <maximumf>, %92, %cst_42 [1] : vector<8x8xf32> to vector<8xf32>
    %94 = vector.shape_cast %93 : vector<8xf32> to vector<8x1xf32>
    %95 = vector.broadcast %94 : vector<8x1xf32> to vector<8x8xf32>
    %96 = arith.subf %92, %95 : vector<8x8xf32>
    %97 = math.exp %96 : vector<8x8xf32>
    %cst_43 = arith.constant dense<0.000000e+00> : vector<8xf32>
    %98 = vector.multi_reduction <add>, %97, %cst_43 [1] : vector<8x8xf32> to vector<8xf32>
    %99 = vector.shape_cast %98 : vector<8xf32> to vector<8x1xf32>
    %100 = tpu.reciprocal %99 {approx = true} : vector<8x1xf32> -> vector<8x1xf32>
    %101 = vector.broadcast %100 : vector<8x1xf32> to vector<8x8xf32>
    %102 = arith.mulf %97, %101 : vector<8x8xf32>
    %103 = arith.truncf %102 : vector<8x8xf32> to vector<8x8xbf16>
    %cst_44 = arith.constant dense<0.000000e+00> : vector<8x8xf32>
    %104 = tpu.matmul %103, %89, %cst_44 {dimension_numbers = #tpu.dot_dimension_numbers<[1], [0], [0], [1], [0, 0, 1, 1], [], []>} : vector<8x8xbf16>, vector<8x8xbf16>, vector<8x8xf32> -> vector<8x8xf32>
    %c0_45 = arith.constant 0 : index
    %c24 = arith.constant 24 : index
    %105 = vector.load %arg15[%c0_45, %c24] : memref<8x32xf32, #tpu.memory_space<vmem>>, vector<8x8xf32>
    tpu.vector_store %arg15[%c0_45, %c24], %104 {strides = array<i32>} : memref<8x32xf32, #tpu.memory_space<vmem>>, vector<8x8xf32>,
    %c0_46 = arith.constant 0 : index
    %c0_47 = arith.constant 0 : index
    %106 = vector.load %arg15[%c0_46, %c0_47] : memref<8x32xf32, #tpu.memory_space<vmem>>, vector<8x32xf32>
    %107 = arith.truncf %106 : vector<8x32xf32> to vector<8x32xbf16>
    %c0_48 = arith.constant 0 : index
    %c0_49 = arith.constant 0 : index
    %108 = vector.load %arg12[%c0_48, %c0_49] : memref<32x32xbf16, #tpu.memory_space<vmem>>, vector<32x32xbf16>
    %cst_50 = arith.constant dense<0.000000e+00> : vector<8x32xf32>
    %109 = tpu.matmul %107, %108, %cst_50 {dimension_numbers = #tpu.dot_dimension_numbers<[1], [0], [0], [1], [0, 0, 1, 1], [], []>} : vector<8x32xbf16>, vector<32x32xbf16>, vector<8x32xf32> -> vector<8x32xf32>
    %c0_51 = arith.constant 0 : index
    %c0_52 = arith.constant 0 : index
    %110 = vector.load %arg13[%c0_51, %c0_52] : memref<1x32xf32, #tpu.memory_space<vmem>>, vector<1x32xf32>
    %111 = vector.broadcast %110 : vector<1x32xf32> to vector<8x32xf32>
    %112 = arith.addf %109, %111 : vector<8x32xf32>
    %c0_53 = arith.constant 0 : index
    %c0_54 = arith.constant 0 : index
    %c0_55 = arith.constant 0 : index
    %113 = vector.load %arg14[%c0_53, %c0_54, %c0_55] : memref<1x8x32xf32, #tpu.memory_space<vmem>>, vector<1x8x32xf32>
    %114 = vector.shape_cast %113 : vector<1x8x32xf32> to vector<8x32xf32>
    %115 = vector.shape_cast %112 : vector<8x32xf32> to vector<1x8x32xf32>
    tpu.vector_store %arg14[%c0_53, %c0_54, %c0_55], %115 {strides = array<i32>} : memref<1x8x32xf32, #tpu.memory_space<vmem>>, vector<1x8x32xf32>,
    return
  }
  func.func @transform_0(%arg0: i32, %arg1: i32) -> (i32, i32, i32) {
    %c0_i32 = arith.constant 0 : i32
    %c0_i32_0 = arith.constant 0 : i32
    return %arg0, %arg1, %c0_i32 : i32, i32, i32
  }
  func.func @transform_1(%arg0: i32, %arg1: i32) -> (i32, i32, i32) {
    %c0_i32 = arith.constant 0 : i32
    %c0_i32_0 = arith.constant 0 : i32
    %c0_i32_1 = arith.constant 0 : i32
    return %arg0, %c0_i32, %c0_i32_0 : i32, i32, i32
  }
  func.func @transform_2(%arg0: i32, %arg1: i32) -> (i32, i32, i32) {
    %c0_i32 = arith.constant 0 : i32
    %c0_i32_0 = arith.constant 0 : i32
    %c0_i32_1 = arith.constant 0 : i32
    return %arg0, %c0_i32, %c0_i32_0 : i32, i32, i32
  }
  func.func @transform_3(%arg0: i32, %arg1: i32) -> (i32, i32, i32) {
    %c0_i32 = arith.constant 0 : i32
    %c0_i32_0 = arith.constant 0 : i32
    return %arg0, %arg1, %c0_i32 : i32, i32, i32
  }
  func.func @transform_4(%arg0: i32, %arg1: i32) -> (i32, i32) {
    %c0_i32 = arith.constant 0 : i32
    %c0_i32_0 = arith.constant 0 : i32
    %c0_i32_1 = arith.constant 0 : i32
    return %c0_i32, %c0_i32_0 : i32, i32
  }
  func.func @transform_5(%arg0: i32, %arg1: i32) -> (i32, i32) {
    %c0_i32 = arith.constant 0 : i32
    %c0_i32_0 = arith.constant 0 : i32
    %c0_i32_1 = arith.constant 0 : i32
    return %c0_i32, %c0_i32_0 : i32, i32
  }
  func.func @transform_6(%arg0: i32, %arg1: i32) -> (i32, i32) {
    %c0_i32 = arith.constant 0 : i32
    %c0_i32_0 = arith.constant 0 : i32
    %c0_i32_1 = arith.constant 0 : i32
    return %c0_i32, %c0_i32_0 : i32, i32
  }
  func.func @transform_7(%arg0: i32, %arg1: i32) -> (i32, i32) {
    %c0_i32 = arith.constant 0 : i32
    %c0_i32_0 = arith.constant 0 : i32
    %c0_i32_1 = arith.constant 0 : i32
    return %c0_i32, %c0_i32_0 : i32, i32
  }
  func.func @transform_8(%arg0: i32, %arg1: i32) -> (i32, i32) {
    %c0_i32 = arith.constant 0 : i32
    %c0_i32_0 = arith.constant 0 : i32
    %c0_i32_1 = arith.constant 0 : i32
    return %c0_i32, %c0_i32_0 : i32, i32
  }
  func.func @transform_9(%arg0: i32, %arg1: i32) -> (i32, i32) {
    %c0_i32 = arith.constant 0 : i32
    %c0_i32_0 = arith.constant 0 : i32
    %c0_i32_1 = arith.constant 0 : i32
    return %c0_i32, %c0_i32_0 : i32, i32
  }
  func.func @transform_10(%arg0: i32, %arg1: i32) -> (i32, i32) {
    %c0_i32 = arith.constant 0 : i32
    %c0_i32_0 = arith.constant 0 : i32
    %c0_i32_1 = arith.constant 0 : i32
    return %c0_i32, %c0_i32_0 : i32, i32
  }
  func.func @transform_11(%arg0: i32, %arg1: i32) -> (i32, i32) {
    %c0_i32 = arith.constant 0 : i32
    %c0_i32_0 = arith.constant 0 : i32
    %c0_i32_1 = arith.constant 0 : i32
    return %c0_i32, %c0_i32_0 : i32, i32
  }
  func.func @transform_12(%arg0: i32, %arg1: i32) -> (i32, i32, i32) {
    %c0_i32 = arith.constant 0 : i32
    %c0_i32_0 = arith.constant 0 : i32
    return %arg0, %arg1, %c0_i32 : i32, i32, i32
  }
}

</mosaic_0001>

<bundles_post_ra>
// kernel: tpu_custom_call.1
= control target key start
LH: loop header
LB: loop body
LE: loop exit
PB: predicated region body
PF: predicated region fallthrough
CT: control target
= control target key end

     0   :  { %s2705_s0 = inlined_call_operand.hbm [shape: f32[2,8,32], index: 0, kind: input, shape index: {}]   ;;  %s2706_s1 = inlined_call_operand.hbm [shape: f32[2,8,32], index: 1, kind: input, shape index: {}]   ;;  %s2707_s2 = inlined_call_operand.hbm [shape: f32[2,8,32], index: 2, kind: input, shape index: {}]   ;;  %s2708_s3 = inlined_call_operand.hbm [shape: bf16[2,8,8], index: 3, kind: input, shape index: {}]   ;;  %s2709_s4 = inlined_call_operand.hbm [shape: bf16[32,32], index: 4, kind: input, shape index: {}]   ;;  %s2710_s5 = inlined_call_operand.vmem [shape: f32[1,32], index: 5, kind: input, shape index: {}]   ;;  %s2711_s6 = inlined_call_operand.vmem [shape: bf16[32,32], index: 6, kind: input, shape index: {}]   ;;  %s2712_s7 = inlined_call_operand.vmem [shape: f32[1,32], index: 7, kind: input, shape index: {}]   ;;  %s2713_s8 = inlined_call_operand.hbm [shape: bf16[32,32], index: 8, kind: input, shape index: {}]   ;;  %s2714_s9 = inlined_call_operand.hbm [shape: f32[1,32], index: 9, kind: input, shape index: {}]   ;;  %s2715_s10 = inlined_call_operand.vmem [shape: bf16[32,32], index: 10, kind: input, shape index: {}]   ;;  %s2716_s11 = inlined_call_operand.vmem [shape: f32[1,32], index: 11, kind: input, shape index: {}]   ;;  %s2717_s12 = inlined_call_operand.hbm [shape: f32[2,8,32], index: 12, kind: output, shape index: {}]  }
   0x1   :  { %2736 = sst [smem:[#allocation29_spill]] %s2706_s1 }
   0x2   :  { %2737 = sst [smem:[#allocation30_spill]] %s2709_s4 }
   0x3   :  { %2738 = sst [smem:[#allocation31_spill]] %s2710_s5 }
   0x4   :  { %2739 = sst [smem:[#allocation32_spill]] %s2712_s7 }
   0x5   :  { %2740 = sst [smem:[#allocation33_spill]] %s2713_s8 }
   0x6   :  { %2741 = sst [smem:[#allocation34_spill]] %s2715_s10 }
   0x7   :  { %2742 = sst [smem:[#allocation35_spill]] %s2716_s11 }
   0x8   :  { %2743 = sst [smem:[#allocation36_spill]] %s2717_s12 }
   0x9   :  { %17 = vsyncpa [#allocation4], 0 }
   0xa   :  { %19 = vsyncpa [#allocation4 + $0x1], 0 }
   0xb   :  { %20 = vsyncpa [#allocation7], 0 }
   0xc   :  { %22 = vsyncpa [#allocation7 + $0x1], 0 }
   0xd   :  { %23 = vsyncpa [#allocation10], 0 }
   0xe   :  { %25 = vsyncpa [#allocation10 + $0x1], 0 }
   0xf   :  { %26 = vsyncpa [#allocation13], 0 }
  0x10   :  { %27 = vsyncpa [#allocation5], 0 }
  0x11   :  { %29 = vsyncpa [#allocation5 + $0x1], 0  ;;  %s2215_s21 = smov 0   ;;  %s2217_s22 = smov 0  }
  0x12   :  { %s2219_s23 = smov 0   ;;  %s2221_s24 = smov 0  }
  0x13   :  { %s2223_s25 = smov 0   ;;  %s2225_s26 = smov 0  }
  0x14 LB: > { %2744 = sst [smem:[#allocation22_spill]] %s2110_s21  ;;  %s2246_s27 = sadd.s32 4294967295, %s2130_s26   ;;  %s2130_s26 = sphi %s2225_s26, %s35_s26   ;;  %s2126_s25 = sphi %s2223_s25, %s2793_s25   ;;  %s2122_s24 = sphi %s2221_s24, %s2792_s24   ;;  %s2118_s23 = sphi %s2219_s23, %s2788_s23   ;;  %s2114_s22 = sphi %s2217_s22, %s2791_s22   ;;  %s2110_s21 = sphi %s2215_s21, %s2790_s21  }
  0x15   : > { %2745 = sst [smem:[#allocation23_spill]] %s2118_s23  ;;  %s1527_s28 = sadd.s32 4294967294, %s2130_s26  }
  0x16   : > { %2746 = sst [smem:[#allocation24_spill]] %s2122_s24  ;;  %p69_p0 = scmp.ne.s32.totalorder %s2114_s22, %s2110_s21 }
  0x17   : > { %p2721_p1 = scmp.eq.s32.totalorder %s2246_s27, 0  ;;  %p349_p3 = scmp.eq.s32.totalorder %s1527_s28, 1 }
  0x18   : > { %p1528_p5 = scmp.ge.s32.totalorder %s2130_s26, 1  ;;  %p356_p7 = scmp.lt.s32.totalorder %s2130_s26, 3 }
  0x19   : > { %p2255_p4 = por %p2721_p1, %p69_p0  ;;  %p2260_p6 = por %p349_p3, %p69_p0 }
  0x1a   : > { %p2265_p8 = pnand %p1528_p5, %p356_p7  ;;  %s2132_s14 = smov [#allocation11]  }
  0x1b   : > { %s2747_s29 = scalar_select %p2255_p4, 1, 0 }
  0x1c   : > { %s2748_s30 = scalar_select %p2260_p6, 1, 0 }
  0x1d   : > { %s2750_s13 = scalar_select %p2265_p8, 1, 0 }
  0x1e   : > { %2749 = sst [smem:[#allocation25_spill]] %s2748_s30  ;;  %s368_s15 = sshll.u32 %s2132_s14, 4  ;;  %s2269_s15 = int_to_ptr.vmem [resolvable:$true] %s368_s15 }
  0x1f   : > { %p1708_p9 = pneg %p2265_p8  ;;  %s2133_s17 = smov [#allocation12]  }
  0x20   : > { %s390_s18 = sshll.u32 %s2133_s17, 4  ;;  %s2752_s4 = sld [smem:[#allocation30_spill]]  ;;  %s2280_s18 = int_to_ptr.vmem [resolvable:$true] %s390_s18 }
  0x21   : > { %p2276_p11 = pnand %p1708_p9, %p2721_p1 }
  0x23   : > { %s2751_s16 = scalar_select %p2276_p11, 1, 0 }
  0x24   : > { %p2290_p13 = pneg %p2276_p11 }
  0x26   : > { %s1828_s28 = scalar_lea.hbm %s2752_s4, 256 }
  0x27   : > { %p1829_p12 = scmp.ne.s32.totalorder %s2752_s4, %s1828_s28  ;;  %p1835_p5 = scmp.lt.u32.totalorder %s1828_s28, %s2752_s4 }
  0x28   : > { %s2753_s21 = scalar_select %p2290_p13, 1, 0 }
  0x29   : > { %p1831_p0 = pnand %p2290_p13, %p1829_p12 }
  0x2b   : > { %p1832_p3 = pneg %p1831_p0 }
  0x2d   : > { %p1837_p7 = pnand %p1835_p5, %p1832_p3 }
  0x2f   : > { %1840 = shalt.err (!%p1837_p7)
}
  0x30   : > { %s1841_s30 = scalar_lea.vmem %s2269_s15, 256  ;;  %p1849_p2 = scmp.lt.s32.totalorder %s2269_s15, %s2269_s15 }
  0x31   : > { %p1842_p9 = scmp.ne.s32.totalorder %s2269_s15, %s1841_s30  ;;  %p1850_p6 = scmp.lt.s32.totalorder %s1841_s30, %s1841_s30 }
  0x33   : > { %p1844_p10 = pnand %p1842_p9, %p2290_p13  ;;  %p1851_p12 = por %p1850_p6, %p1849_p2 }
  0x35   : > { %p1845_p1 = pneg %p1844_p10 }
  0x37   : > { %p1852_p0 = pnand %p1851_p12, %p1845_p1 }
  0x39   : > { %1855 = shalt.err (!%p1852_p0)
}
  0x3a   : > { %s2134_s19 = smov 64   ;;  %s2135_s12 = smov 4  }
  0x3b   : > { %1711 = dma.hbm_to_vmem [thread:$0]  (!%p2276_p11), %s2752_s4, 256, %s2269_s15, [#allocation10], %s2134_s19, %s2134_s19, %s2135_s12  }
  0x3c   : > { %s2754_s8 = sld [smem:[#allocation33_spill]] }
  0x42   : > { %s1856_s11 = scalar_lea.hbm %s2754_s8, 256 }
  0x43   : > { %p1857_p2 = scmp.ne.s32.totalorder %s2754_s8, %s1856_s11  ;;  %p1863_p10 = scmp.lt.u32.totalorder %s1856_s11, %s2754_s8 }
  0x45   : > { %p1859_p1 = pnand %p1857_p2, %p2290_p13 }
  0x47   : > { %p1860_p6 = pneg %p1859_p1 }
  0x49   : > { %p1865_p3 = pnand %p1863_p10, %p1860_p6 }
  0x4b   : > { %1868 = shalt.err (!%p1865_p3)
}
  0x4c   : > { %s1869_s15 = scalar_lea.vmem %s2280_s18, 256  ;;  %p1877_p12 = scmp.lt.s32.totalorder %s2280_s18, %s2280_s18 }
  0x4d   : > { %p1870_p5 = scmp.ne.s32.totalorder %s2280_s18, %s1869_s15  ;;  %p1878_p0 = scmp.lt.s32.totalorder %s1869_s15, %s1869_s15 }
  0x4f   : > { %p1872_p7 = pnand %p1870_p5, %p2290_p13  ;;  %p1879_p2 = por %p1878_p0, %p1877_p12 }
  0x51   : > { %p1873_p9 = pneg %p1872_p7 }
  0x53   : > { %p1880_p1 = pnand %p1879_p2, %p1873_p9 }
  0x55   : > { %1883 = shalt.err (!%p1880_p1)
}
  0x56   : > { %1714 = dma.hbm_to_vmem [thread:$0]  (!%p2276_p11), %s2754_s8, 256, %s2280_s18, [#allocation13], %s2134_s19, %s2134_s19, %s2135_s12  }
  0x57   : > { %s47_s11 = sadd.s32 1, %s2126_s25  ;;  %s56_s24 = sadd.s32 1, %s2118_s23 }
  0x58   : > { %p49_p6 = scmp.ge.s32.totalorder %s47_s11, 2  ;;  %p63_p10 = scmp.ne.s32.totalorder %s2118_s23, %s2114_s22 }
  0x59   : > { %p64_p3 = scmp.eq.s32.totalorder %s2130_s26, 0  ;;  %p1738_p5 = scmp.lt.s32.totalorder %s2130_s26, 2 }
  0x5a   : > { %s2795_s11 = smov (%p49_p6, %s47_s11), 0  ;;  %p2756_p9 = scmp.eq.s32.totalorder %s2246_s27, 1 }
  0x5b   : > { %2755 = sst [smem:[#allocation26_spill]] %s2795_s11  ;;  %p65_p7 = por %p64_p3, %p63_p10 }
  0x5c   : > { %p2344_p12 = por %p2756_p9, %p63_p10  ;;  %s51_s28 = ssub.s32 %s2126_s25, %s2795_s11 }
  0x5d   : > { %s2351_s18 = sand.u32 1, %s2118_s23   ;;  %p54_p0 = scmp.eq.s32.totalorder %s51_s28, 0 }
  0x5e   : > { %s2757_s20 = scalar_select %p2344_p12, 1, 0 }
  0x5f   : > { %s2354_s19 = sshll.u32 %s2351_s18, 3  ;;  %s2357_s12 = sshll.u32 %s2126_s25, 7 }
  0x60   : > { %2758 = sst [smem:[#allocation27_spill]] %s2757_s20  ;;  %p2359_p2 = pnand %p1738_p5, %p65_p7 }
  0x61   : > { %s2364_s17 = scalar_select %p54_p0, %s2118_s23, %s56_s24  }
  0x62   : > { %s2759_s14 = scalar_select %p2359_p2, 1, 0 }
  0x63   : > { %2760 = sst [smem:[#allocation28_spill]] %s2364_s17  ;;  %s2727_s30 = sand.u32 1, %s2130_s26  }
  0x64   : > { %s2761_s1 = sld [smem:[#allocation29_spill]]  ;;  %s444_s28 = scalar_lea.vmem [#allocation6], %s2354_s19 }
  0x65   : > { %s451_s4 = sshll.u32 %s444_s28, 4  ;;  %s2378_s8 = scalar_lea.sflag [#allocation7], %s2727_s30  ;;  %s2374_s4 = int_to_ptr.vmem [resolvable:$true] %s451_s4 }
  0x66   : > { %p2384_p6 = pneg %p2359_p2 }
  0x6a   : > { %s2371_s10 = scalar_lea.hbm %s2761_s1, %s2357_s12  ;;  %s1889_s28 = scalar_lea.hbm %s2761_s1, 256 }
  0x6b   : > { %s1884_s11 = scalar_lea.hbm %s2371_s10, 128  ;;  %p1890_p5 = scmp.lt.u32.totalorder %s2371_s10, %s2761_s1 }
  0x6c   : > { %p1885_p1 = scmp.ne.s32.totalorder %s2371_s10, %s1884_s11  ;;  %p1891_p7 = scmp.lt.u32.totalorder %s1889_s28, %s1884_s11 }
  0x6d   : > { %p1893_p0 = scmp.lt.u32.totalorder %s1884_s11, %s2371_s10 }
  0x6e   : > { %p1887_p10 = pnand %p2384_p6, %p1885_p1  ;;  %p1892_p9 = por %p1891_p7, %p1890_p5 }
  0x70   : > { %p1888_p3 = pneg %p1887_p10  ;;  %p1894_p12 = por %p1893_p0, %p1892_p9 }
  0x72   : > { %p1895_p4 = pnand %p1894_p12, %p1888_p3 }
  0x74   : > { %1898 = shalt.err (!%p1895_p4)
}
  0x75   : > { %s1899_s30 = scalar_lea.vmem %s2374_s4, 128  ;;  %s2136_s15 = smov [#allocation6]  }
  0x76   : > { %p1900_p1 = scmp.ne.s32.totalorder %s2374_s4, %s1899_s30  ;;  %s1904_s5 = sshll.u32 %s2136_s15, 4  ;;  %s1905_s5 = int_to_ptr.vmem [resolvable:$false] %s1904_s5 }
  0x77   : > { %s1906_s23 = scalar_lea.vmem %s1905_s5, 256  ;;  %p1907_p11 = scmp.lt.s32.totalorder %s2374_s4, %s1905_s5 }
  0x78   : > { %p1902_p10 = pnand %p1900_p1, %p2384_p6  ;;  %p1908_p13 = scmp.lt.s32.totalorder %s1906_s23, %s1899_s30 }
  0x7a   : > { %p1903_p8 = pneg %p1902_p10  ;;  %p1909_p5 = por %p1908_p13, %p1907_p11 }
  0x7c   : > { %p1910_p7 = pnand %p1909_p5, %p1903_p8 }
  0x7e   : > { %1913 = shalt.err (!%p1910_p7)
}
  0x7f   : > { %1724 = dma.hbm_to_vmem [thread:$0]  (!%p2359_p2), %s2371_s10, 128, %s2374_s4, %s2378_s8  }
  0x80   : > { %s2137_s11 = smov [#allocation14]   ;;  %s2412_s1 = scalar_lea.hbm %s2705_s0, %s2357_s12 }
  0x81   : > { %s404_s17 = sshll.u32 %s2137_s11, 4  ;;  %s1914_s23 = scalar_lea.hbm %s2714_s9, 16  ;;  %s405_s17 = int_to_ptr.vmem [resolvable:$true] %s404_s17 }
  0x82   : > { %p1915_p4 = scmp.ne.s32.totalorder %s2714_s9, %s1914_s23  ;;  %p2763_p8 = scmp.ne.s32.totalorder %s2753_s21, 0 }
  0x83   : > { %p1921_p12 = scmp.lt.u32.totalorder %s1914_s23, %s2714_s9 }
  0x84   : > { %p1917_p11 = pnand %p1915_p4, %p2763_p8 }
  0x86   : > { %p1918_p13 = pneg %p1917_p11 }
  0x88   : > { %p1923_p3 = pnand %p1921_p12, %p1918_p13 }
  0x8a   : > { %1926 = shalt.err (!%p1923_p3)
}
  0x8b   : > { %s1927_s11 = scalar_lea.vmem %s405_s17, 16  ;;  %s1934_s28 = scalar_lea.vmem %s405_s17, 32 }
  0x8c   : > { %p1928_p9 = scmp.ne.s32.totalorder %s405_s17, %s1927_s11  ;;  %p1935_p10 = scmp.lt.s32.totalorder %s405_s17, %s405_s17 }
  0x8d   : > { %p1936_p5 = scmp.lt.s32.totalorder %s1934_s28, %s1927_s11 }
  0x8e   : > { %p1930_p0 = pnand %p1928_p9, %p2763_p8 }
  0x8f   : > { %p1937_p7 = por %p1936_p5, %p1935_p10 }
  0x90   : > { %p1931_p1 = pneg %p1930_p0 }
  0x92   : > { %p1938_p2 = pnand %p1937_p7, %p1931_p1 }
  0x94   : > { %1941 = shalt.err (!%p1938_p2)
}
  0x95   : > { %p2764_p4 = scmp.ne.s32.totalorder %s2751_s16, 0  ;;  %s425_s21 = scalar_lea.vmem [#allocation3], %s2354_s19 }
  0x96   : > { %s433_s15 = sshll.u32 %s425_s21, 4  ;;  %s2439_s16 = scalar_lea.hbm %s2707_s2, %s2357_s12  ;;  %s2433_s15 = int_to_ptr.vmem [resolvable:$true] %s433_s15 }
  0x97   : > { %1717 = dma.hbm_to_vmem [thread:$0]  (!%p2764_p4), %s2714_s9, 16, %s405_s17, [#allocation13]  }
  0x98   : > { %s422_s23 = scalar_lea.sflag [#allocation4], %s2351_s18  ;;  %s1942_s4 = scalar_lea.hbm %s2412_s1, 128 }
  0x99   : > { %p1943_p2 = scmp.ne.s32.totalorder %s2412_s1, %s1942_s4  ;;  %s1947_s28 = scalar_lea.hbm %s2705_s0, 256 }
  0x9a   : > { %p1948_p13 = scmp.lt.u32.totalorder %s2412_s1, %s2705_s0  ;;  %p1949_p12 = scmp.lt.u32.totalorder %s1947_s28, %s1942_s4 }
  0x9b   : > { %p1945_p8 = pnand %p1943_p2, %p2384_p6  ;;  %p1951_p9 = scmp.lt.u32.totalorder %s1942_s4, %s2412_s1 }
  0x9c   : > { %p1950_p3 = por %p1949_p12, %p1948_p13 }
  0x9d   : > { %p1946_p11 = pneg %p1945_p8 }
  0x9e   : > { %p1952_p0 = por %p1951_p9, %p1950_p3 }
  0xa0   : > { %p1953_p1 = pnand %p1952_p0, %p1946_p11 }
  0xa2   : > { %1956 = shalt.err (!%p1953_p1)
}
  0xa3   : > { %s1957_s12 = scalar_lea.vmem %s2433_s15, 128  ;;  %s2138_s20 = smov [#allocation3]  }
  0xa4   : > { %p1958_p10 = scmp.ne.s32.totalorder %s2433_s15, %s1957_s12  ;;  %s1962_s21 = sshll.u32 %s2138_s20, 4  ;;  %s1963_s21 = int_to_ptr.vmem [resolvable:$false] %s1962_s21 }
  0xa5   : > { %s1964_s30 = scalar_lea.vmem %s1963_s21, 256  ;;  %p1965_p4 = scmp.lt.s32.totalorder %s2433_s15, %s1963_s21 }
  0xa6   : > { %p1960_p5 = pnand %p1958_p10, %p2384_p6  ;;  %p1966_p2 = scmp.lt.s32.totalorder %s1964_s30, %s1957_s12 }
  0xa8   : > { %p1961_p7 = pneg %p1960_p5  ;;  %p1967_p8 = por %p1966_p2, %p1965_p4 }
  0xaa   : > { %p1968_p13 = pnand %p1967_p8, %p1961_p7 }
  0xac   : > { %1971 = shalt.err (!%p1968_p13)
}
  0xad   : > { %p2765_p11 = scmp.ne.s32.totalorder %s2759_s14, 0  ;;  %s462_s5 = scalar_lea.vmem [#allocation8], %s2354_s19 }
  0xae   : > { %s469_s4 = sshll.u32 %s462_s5, 4  ;;  %s1539_s10 = sshll.u32 %s2351_s18, 2  ;;  %s470_s4 = int_to_ptr.vmem [resolvable:$true] %s469_s4 }
  0xaf   : > { %1721 = dma.hbm_to_vmem [thread:$0]  (!%p2765_p11), %s2412_s1, 128, %s2433_s15, %s422_s23  }
  0xb0   : > { %s1972_s11 = scalar_lea.hbm %s2439_s16, 128  ;;  %s1977_s7 = scalar_lea.hbm %s2707_s2, 256 }
  0xb1   : > { %p1973_p12 = scmp.ne.s32.totalorder %s2439_s16, %s1972_s11  ;;  %p1978_p0 = scmp.lt.u32.totalorder %s2439_s16, %s2707_s2 }
  0xb2   : > { %p1979_p1 = scmp.lt.u32.totalorder %s1977_s7, %s1972_s11  ;;  %p1981_p5 = scmp.lt.u32.totalorder %s1972_s11, %s2439_s16 }
  0xb3   : > { %p1975_p3 = pnand %p1973_p12, %p2384_p6 }
  0xb4   : > { %p1980_p10 = por %p1979_p1, %p1978_p0 }
  0xb5   : > { %p1976_p9 = pneg %p1975_p3 }
  0xb6   : > { %p1982_p7 = por %p1981_p5, %p1980_p10 }
  0xb8   : > { %p1983_p4 = pnand %p1982_p7, %p1976_p9 }
  0xba   : > { %1986 = shalt.err (!%p1983_p4)
}
  0xbb   : > { %s1987_s1 = scalar_lea.vmem %s470_s4, 128  ;;  %s2139_s19 = smov [#allocation8]  }
  0xbc   : > { %p1988_p2 = scmp.ne.s32.totalorder %s470_s4, %s1987_s1  ;;  %s1992_s15 = sshll.u32 %s2139_s19, 4  ;;  %s1993_s15 = int_to_ptr.vmem [resolvable:$false] %s1992_s15 }
  0xbd   : > { %s1994_s23 = scalar_lea.vmem %s1993_s15, 256  ;;  %p1995_p12 = scmp.lt.s32.totalorder %s470_s4, %s1993_s15 }
  0xbe   : > { %p1990_p8 = pnand %p1988_p2, %p2384_p6  ;;  %p1996_p3 = scmp.lt.s32.totalorder %s1994_s23, %s1987_s1 }
  0xc0   : > { %p1991_p13 = pneg %p1990_p8  ;;  %p1997_p11 = por %p1996_p3, %p1995_p12 }
  0xc2   : > { %p1998_p0 = pnand %p1997_p11, %p1991_p13 }
  0xc4   : > { %2001 = shalt.err (!%p1998_p0)
}
  0xc5   : > { %p2766_p1 = scmp.ne.s32.totalorder %s2759_s14, 0  ;;  %s1540_s21 = sshll.u32 %s2126_s25, 6 }
  0xc6   : > { %s480_s30 = scalar_lea.vmem [#allocation9], %s1539_s10  ;;  %s2489_s17 = scalar_lea.hbm %s2708_s3, %s1540_s21 }
  0xc7   : > { %1727 = dma.hbm_to_vmem [thread:$0]  (!%p2766_p1), %s2439_s16, 128, %s470_s4, %s2378_s8  }
  0xc8   : > { %s488_s5 = sshll.u32 %s480_s30, 4  ;;  %s2767_s7 = sand.u32 1, %s2130_s26   ;;  %s489_s5 = int_to_ptr.vmem [resolvable:$true] %s488_s5 }
  0xc9   : > { %s477_s12 = scalar_lea.sflag [#allocation10], %s2767_s7  ;;  %s2002_s20 = scalar_lea.hbm %s2489_s17, 64 }
  0xca   : > { %p2003_p11 = scmp.ne.s32.totalorder %s2489_s17, %s2002_s20  ;;  %s2007_s16 = scalar_lea.hbm %s2708_s3, 128 }
  0xcb   : > { %p2008_p5 = scmp.lt.u32.totalorder %s2489_s17, %s2708_s3  ;;  %p2009_p7 = scmp.lt.u32.totalorder %s2007_s16, %s2002_s20 }
  0xcc   : > { %p2005_p9 = pnand %p2003_p11, %p2384_p6  ;;  %p2011_p2 = scmp.lt.u32.totalorder %s2002_s20, %s2489_s17 }
  0xcd   : > { %p2010_p4 = por %p2009_p7, %p2008_p5 }
  0xce   : > { %p2006_p10 = pneg %p2005_p9 }
  0xcf   : > { %p2012_p8 = por %p2011_p2, %p2010_p4 }
  0xd1   : > { %p2013_p13 = pnand %p2012_p8, %p2006_p10 }
  0xd3   : > { %2016 = shalt.err (!%p2013_p13)
}
  0xd4   : > { %s2017_s1 = scalar_lea.vmem %s489_s5, 64  ;;  %s2140_s19 = smov [#allocation9]  }
  0xd5   : > { %p2018_p12 = scmp.ne.s32.totalorder %s489_s5, %s2017_s1  ;;  %s2022_s15 = sshll.u32 %s2140_s19, 4  ;;  %s2023_s15 = int_to_ptr.vmem [resolvable:$false] %s2022_s15 }
  0xd6   : > { %s2024_s23 = scalar_lea.vmem %s2023_s15, 128  ;;  %p2025_p11 = scmp.lt.s32.totalorder %s489_s5, %s2023_s15 }
  0xd7   : > { %p2020_p3 = pnand %p2018_p12, %p2384_p6  ;;  %p2026_p9 = scmp.lt.s32.totalorder %s2024_s23, %s2017_s1 }
  0xd9   : > { %p2021_p0 = pneg %p2020_p3  ;;  %p2027_p1 = por %p2026_p9, %p2025_p11 }
  0xdb   : > { %p2028_p5 = pnand %p2027_p1, %p2021_p0 }
  0xdd   : > { %2031 = shalt.err (!%p2028_p5)
}
  0xde   : > { %p2768_p7 = scmp.ne.s32.totalorder %s2759_s14, 0  ;;  %p2769_p10 = scmp.ne.s32.totalorder %s2750_s13, 0 }
  0xdf   : > { %s2513_s24 = sand.u32 (!%p2769_p10), 1, %s2114_s22   ;;  %p2770_p6 = scmp.ne.s32.totalorder (!%p2769_p10), %s2747_s29, 0 }
  0xe0   : > { %1730 = dma.hbm_to_vmem [thread:$0]  (!%p2768_p7), %s2489_s17, 64, %s489_s5, %s477_s12  }
  0xe1   : > { %497 = sbr.rel (%p2769_p10) target bundleno = 1706 (0x6aa), region = 68  ;;  %s2516_s21 = sshll.u32 (!%p2769_p10), %s2513_s24, 3 }
  0xe2   : > { %s500_s30 = scalar_lea.sflag (!%p2769_p10), [#allocation4], %s2513_s24  ;;  %s503_s11 = scalar_lea.vmem (!%p2769_p10), [#allocation3], %s2516_s21 }
  0xe8   : > { %2085 = dma.done.wait (%p2770_p6), %s500_s30, 128  }
  0xe9   : > { %2087 = vsyncadd (%p2770_p6), %s500_s30, 4294967168  ;;  %s508_s13 = sand.u32 1, %s2246_s27   ;;  %s512_s5 = scalar_lea.vmem [#allocation6], %s2516_s21 }
  0xea   : > { %s509_s14 = scalar_lea.sflag [#allocation7], %s508_s13 }
  0xeb   : > { %2089 = dma.done.wait (%p2770_p6), %s509_s14, 256  }
  0xec   : > { %2091 = vsyncadd (%p2770_p6), %s509_s14, 4294967040  ;;  %s1545_s28 = sshll.u32 %s2513_s24, 2  ;;  %s521_s17 = scalar_lea.vmem [#allocation8], %s2516_s21 }
  0xed   : > { %s527_s7 = scalar_lea.sflag [#allocation10], %s508_s13  ;;  %s2532_s12 = scalar_lea.vmem [#allocation9], %s1545_s28 }
  0xee   : > { %2093 = dma.done.wait (%p2770_p6), %s527_s7, 64  }
  0xef   : > { %2095 = vsyncadd (%p2770_p6), %s527_s7, 4294967232  ;;  %p2771_p1 = scmp.eq.s32.totalorder %s2246_s27, 0 }
  0xf1   : > { %2097 = dma.done.wait (%p2771_p1), [#allocation10], 256   ;;  %p2772_p4 = pmov %p2771_p1 }
  0xf2   : > { %p2773_p2 = pmov %p2771_p1 }
  0xf3   : > { %2099 = vsyncadd (%p2772_p4), [#allocation10], 4294967040 }
  0xf4   : > { %2101 = dma.done.wait (%p2773_p2), [#allocation13], 272   ;;  %p2774_p8 = pmov %p2771_p1 }
  0xf5   : > { %v2141_v0 = vmov 0.0   ;;  %vm2142_vm0 = vmmov 0   ;;  %v1804_v1 = vld [vmem:[%s2711_s6] sm:$0xff]   ;;  %v1806_v3 = vld [vmem:[%s2711_s6 + $0x8] sm:$0xff]   ;;  %vm630_vm1 = vcmask 261120   ;;  %s2775_s4 = sld [smem:[#allocation32_spill]] }
  0xf6   : > { %2103 = vsyncadd (%p2774_p8), [#allocation13], 4294967024  ;;  %1614 = vmatprep.subr.bf16.mxu1 %v2141_v0  ;;  %1606 = vmatprep.subr.bf16.mxu0 %v2141_v0  ;;  %v1805_v2 = vld [vmem:[#allocation11] sm:$0xff]   ;;  %v1807_v5 = vld [vmem:[#allocation11 + $0x8] sm:$0xff]   ;;  %s2776_s19 = sld [smem:[#allocation31_spill]]  ;;  %vm809_vm2 = vcmask 64512  }
  0xf7   : > { %1618 = vmatprep.mubr.msk.bf16.mxu1 %vm2142_vm0, %v2141_v0  ;;  %1610 = vmatprep.mubr.msk.bf16.mxu0 %vm2142_vm0, %v2141_v0  ;;  %v601_v4 = vld [vmem:[%s512_s5] sm:$0xff]  ;;  %v599_v6 = vld [vmem:[%s503_s11] sm:$0xff]  ;;  %s2143_s15 = smov 112   ;;  %s2144_s23 = smov 120   ;;  %vm871_vm3 = vcmask 1043456   ;;  %vm1033_vm4 = vcmask 130112  }
  0xf8   : > { %1615 = vmatpush3.bf16.msra.mxu1 %v1804_v1  ;;  %1607 = vmatpush3.bf16.msra.mxu0 %v1805_v2  ;;  %v602_v7 = vpack.c.bf16 %v601_v4, %v601_v4  ;;  %v600_v8 = vpack.c.bf16 %v599_v6, %v599_v6  ;;  %s2145_s30 = smov 104   ;;  %v1808_v24 = vld [vmem:[#allocation12] sm:$0xff]   ;;  %v1809_v25 = vld [vmem:[#allocation12 + $0x8] sm:$0xff]   ;;  %v1558_v45 = vld [vmem:[#allocation14] ss:$0 sm:$0xff]  ;;  %s2146_s11 = smov 8  }
  0xf9   : > { %1616 = vmatprep.subr.bf16.mxu1 %v2141_v0  ;;  %1608 = vmatprep.subr.bf16.mxu0 %v2141_v0  ;;  %v603_v26 = vld [vmem:[%s521_s17] sm:$0xff]  ;;  %v605_v37 = vld [vmem:[%s2532_s12] sm:$0xf]  ;;  %s2777_s5 = sld [smem:[#allocation34_spill]]  ;;  %s2147_s7 = smov 16   ;;  %vm1149_vm5 = vcmask 195712  }
  0xfa   : > { %v604_v27 = vpack.c.bf16 %v603_v26, %v603_v26  ;;  %v606_v38 = vunpack.c.l.bf16 %v605_v37  ;;  %s2148_s12 = smov 24   ;;  %s2778_s29 = sld [smem:[#allocation24_spill]]  ;;  %vm1265_vm6 = vcmask 261312  }
  0xfb   : > { %v1554_v9 = vld [vmem:[%s2775_s4] ss:$0 sm:$0xff]  ;;  %s2779_s8 = sld [smem:[#allocation35_spill]]  ;;  %s597_s4 = scalar_lea.vmem [#allocation15], %s2516_s21 }
  0xfc   : > { %1617 = vmatpush3.bf16.msra.mxu1 %v1806_v3  ;;  %1609 = vmatpush3.bf16.msra.mxu0 %v1807_v5  ;;  %v1550_v10 = vld [vmem:[%s2776_s19] ss:$0 sm:$0xff]  ;;  %s2780_s18 = sld [smem:[#allocation27_spill]]  ;;  %s1351_s10 = sshll.u32 %s597_s4, 4  ;;  %s2657_s10 = int_to_ptr.vmem [resolvable:$true] %s1351_s10 }
  0xfd   : > { %1630 = vmatprep.subr.bf16.mxu1 %v2141_v0  ;;  %1622 = vmatprep.subr.bf16.mxu0 %v2141_v0  ;;  %s2032_s21 = scalar_lea.vmem %s2657_s10, 128 }
  0xfe   : > { %p2033_p13 = scmp.ne.s32.totalorder %s2657_s10, %s2032_s21 }
  0xff   : > { %1619 = vmatmul.mubr.msk.bf16.vlgmr.msra.gmra.mrb[0].mxu1 %vm630_vm1, %v602_v7  ;;  %1611 = vmatmul.mubr.msk.bf16.vlgmr.msra.gmra.mrb[0].mxu0 %vm630_vm1, %v600_v8 }
 0x100   : > { %1632 = vmatprep.mubr.msk.bf16.mxu1 %vm2142_vm0, %v2141_v0  ;;  %1626 = vmatprep.mubr.msk.bf16.mxu0 %vm2142_vm0, %v2141_v0  ;;  %s1575_s16 = sshll.u32 %s2778_s29, 7 }
 0x101   : > { %1623 = vmatpush3.bf16.msra.mxu0 %v1808_v24 }
 0x102   : > { %1624 = vmatprep.subr.bf16.mxu0 %v2141_v0  ;;  %p2782_p12 = scmp.ne.s32.totalorder %s2780_s18, 0 }
 0x104   : > { %p2034_p3 = pnand %p2033_p13, %p2782_p12 }
 0x105   : > { %1625 = vmatpush3.bf16.msra.mxu0 %v1809_v25 }
 0x106   : > { %1636 = vmatprep.subr.bf16.mxu0 %v2141_v0  ;;  %p2035_p0 = pneg %p2034_p3 }
 0x108   : > { %1627 = vmatmul.mubr.msk.bf16.vlgmr.msra.gmra.mrb[4].mxu0 %vm630_vm1, %v604_v27 }
 0x109   : > { %1638 = vmatprep.mubr.msk.bf16.mxu0 %vm2142_vm0, %v2141_v0 }
 0x1d2   : > { %v735_v11 = vpop.f32.mrb[0].mxu1  ;;  %v668_v14 = vpop.f32.mrb[0].mxu0 }
 0x1d3   : > { %v736_v12 = vadd.f32 %v1554_v9, %v735_v11  ;;  %v1620_v13 = vpop.f32.mrb[1].mxu1  ;;  %v669_v16 = vadd.f32 %v1550_v10, %v668_v14  ;;  %v1612_v17 = vpop.f32.mrb[1].mxu0 }
 0x1d4   : > { %v738_v15 = vpop.f32.mrb[2].mxu1  ;;  %v671_v20 = vpop.f32.mrb[2].mxu0 }
 0x1d5   : > { %v741_v18 = vpack.c.bf16 %v736_v12, %v736_v12  ;;  %v1621_v19 = vpop.f32.mrb[3].mxu1  ;;  %v1613_v21 = vpop.f32.mrb[3].mxu0  ;;  %v674_v22 = vpack.c.bf16 %v669_v16, %v669_v16 }
 0x1d7   : > { %1037 = vrot.lane.b32.xlu1 %v741_v18, %s2143_s15  ;;  %920 = vrot.lane.b32.xlu0 %v741_v18, %s2144_s23  ;;  %v814_v23 = vsel %vm809_vm2, %v741_v18, 0 }
 0x1d8   : > { %1631 = vmatpush3.bf16.xpose.msra.mxu1 %v814_v23 }
 0x1d9   : > { %1642 = vmatprep.subr.bf16.mxu1 %v2141_v0 }
 0x1db   : > { %1035 = vrot.lane.b32.xlu1 %v674_v22, %s2143_s15  ;;  %917 = vrot.lane.b32.xlu0 %v674_v22, %s2144_s23  ;;  %v802_v46 = vpop.f32.mrb[4].mxu0 }
 0x1dc   : > { %v803_v47 = vadd.f32 %v1558_v45, %v802_v46  ;;  %v1628_v48 = vpop.f32.mrb[5].mxu0 }
 0x1dd   : > { %v805_v49 = vpop.f32.mrb[6].mxu0 }
 0x1de   : > { %v808_v50 = vpack.c.bf16 %v803_v47, %v803_v47  ;;  %v1629_v51 = vpop.f32.mrb[7].mxu0 }
 0x1df   : > { %1151 = vrot.lane.b32.xlu1 %v674_v22, %s2145_s30  ;;  %1153 = vrot.lane.b32.xlu0 %v741_v18, %s2145_s30 }
 0x1e0   : > { %1633 = vmatmul.mubr.msk.bf16.vlgmr.msra.gmra.mrb[4].mxu1 %vm809_vm2, %v674_v22  ;;  %v873_v52 = vsel %vm871_vm3, %v808_v50, 0 }
 0x1e1   : > { %1644 = vmatprep.mubr.msk.bf16.mxu1 %vm2142_vm0, %v2141_v0  ;;  %1637 = vmatpush3.bf16.msra.mxu0 %v873_v52 }
 0x1e2   : > { %1648 = vmatprep.subr.bf16.mxu0 %v2141_v0 }
 0x249   : > { %v921_v28 = vpop.permute.xlu0 %920  ;;  %v1038_v30 = vpop.permute.xlu1 %1037 }
 0x24a   : > { %v926_v29 = vsel %vm809_vm2, %v921_v28, 0  ;;  %v1043_v32 = vsel %vm809_vm2, %v1038_v30, 0 }
 0x24b   : > { %1643 = vmatpush3.bf16.xpose.msra.mxu1 %v926_v29 }
 0x24c   : > { %1654 = vmatprep.subr.bf16.mxu1 %v2141_v0 }
 0x24d   : > { %v918_v31 = vpop.permute.xlu0 %917  ;;  %v1036_v34 = vpop.permute.xlu1 %1035 }
 0x251   : > { %v1154_v33 = vpop.permute.xlu0 %1153  ;;  %v1152_v36 = vpop.permute.xlu1 %1151 }
 0x252   : > { %1645 = vmatmul.mubr.msk.bf16.vlgmr.msra.gmra.mrb[8].mxu1 %vm809_vm2, %v918_v31  ;;  %v1159_v35 = vsel %vm809_vm2, %v1154_v33, 0 }
 0x253   : > { %1655 = vmatpush3.bf16.xpose.msra.mxu1 %v1043_v32  ;;  %1656 = vmatprep.mubr.msk.bf16.mxu1 %vm2142_vm0, %v2141_v0 }
 0x254   : > { %1666 = vmatprep.subr.bf16.mxu1 %v2141_v0 }
 0x25a   : > { %1657 = vmatmul.mubr.msk.bf16.vlgmr.msra.gmra.mrb[12].mxu1 %vm809_vm2, %v1036_v34 }
 0x25b   : > { %1667 = vmatpush3.bf16.xpose.msra.mxu1 %v1159_v35  ;;  %1668 = vmatprep.mubr.msk.bf16.mxu1 %vm2142_vm0, %v2141_v0 }
 0x25c   : > { %1678 = vmatprep.subr.bf16.mxu1 %v2141_v0 }
 0x262   : > { %1669 = vmatmul.mubr.msk.bf16.vlgmr.msra.gmra.mrb[16].mxu1 %vm809_vm2, %v1152_v36 }
 0x263   : > { %1682 = vmatprep.mubr.msk.bf16.mxu1 %vm2142_vm0, %v2141_v0 }
 0x2b3   : > { %v850_v39 = vpop.f32.mrb[4].mxu1 }
 0x2b4   : > { %v851_v40 = vadd.f32 %v850_v39, %v606_v38  ;;  %v1634_v41 = vpop.f32.mrb[5].mxu1 }
 0x2b5   : > { %v853_v42 = vpop.f32.mrb[6].mxu1 }
 0x2b6   : > { %v1635_v43 = vpop.f32.mrb[7].mxu1  ;;  %v856_v44 = vsel %vm809_vm2, %v851_v40, -inf }
 0x2b7   : > { %857 = vmax.xlane.f32.xlu0 %v856_v44 }
 0x325   : > { %v962_v53 = vpop.f32.mrb[8].mxu1 }
 0x326   : > { %v963_v54 = vadd.f32 %v962_v53, %v606_v38  ;;  %v1646_v55 = vpop.f32.mrb[9].mxu1 }
 0x327   : > { %v965_v56 = vpop.f32.mrb[10].mxu1 }
 0x328   : > { %v1647_v57 = vpop.f32.mrb[11].mxu1  ;;  %v968_v58 = vsel %vm809_vm2, %v963_v54, -inf }
 0x329   : > { %969 = vmax.xlane.f32.xlu1 %v968_v58  ;;  %v1810_v58 = vld [vmem:[%s2777_s5] sm:$0xff]  }
 0x32a   : > { %1679 = vmatpush3.bf16.msra.mxu1 %v1810_v58 }
 0x32b   : > { %1680 = vmatprep.subr.bf16.mxu1 %v2141_v0 }
 0x32d   : > { %v1079_v59 = vpop.f32.mrb[12].mxu1 }
 0x32e   : > { %v1080_v60 = vadd.f32 %v1079_v59, %v606_v38  ;;  %v1658_v61 = vpop.f32.mrb[13].mxu1  ;;  %v1811_v59 = vld [vmem:[%s2777_s5 + $0x8] sm:$0xff]  }
 0x32f   : > { %v1082_v62 = vpop.f32.mrb[14].mxu1  ;;  %1681 = vmatpush3.bf16.msra.mxu1 %v1811_v59 }
 0x330   : > { %v1659_v63 = vpop.f32.mrb[15].mxu1  ;;  %v1085_v1 = vsel %vm809_vm2, %v1080_v60, -inf }
 0x331   : > { %1086 = vmax.xlane.f32.xlu0 %v1085_v1 }
 0x335   : > { %v1195_v2 = vpop.f32.mrb[16].mxu1 }
 0x336   : > { %v1196_v3 = vadd.f32 %v1195_v2, %v606_v38  ;;  %v1670_v4 = vpop.f32.mrb[17].mxu1 }
 0x337   : > { %v1198_v5 = vpop.f32.mrb[18].mxu1 }
 0x338   : > { %v1671_v6 = vpop.f32.mrb[19].mxu1  ;;  %v1201_v7 = vsel %vm809_vm2, %v1196_v3, -inf }
 0x339   : > { %1202 = vmax.xlane.f32.xlu0 %v1201_v7 }
 0x344   : > { %v858_v8 = vpop.xlane.xlu0 %857 }
 0x345   : > { %v859_v9 = vsub.f32 %v851_v40, %v858_v8 }
 0x347   : > { %v860_v10 = vmul.f32 1.442695, %v859_v9  ;;  %v1570_v9 = vld [vmem:[%s2779_s8] ss:$0 sm:$0xff] }
 0x349   : > { %1812 = vpow2.f32 %v860_v10 }
 0x353   : > { %v1813_v11 = vpop.eup %1812 }
 0x354   : > { %v862_v12 = vsel %vm809_vm2, %v1813_v11, 0.0 }
 0x355   : > { %863 = vadd.xlane.f32.xlu1 %v862_v12 }
 0x366   : > { %981 = vrot.lane.b32.xlu1 %v808_v50, %s2144_s23 }
 0x3b6   : > { %v970_v13 = vpop.xlane.xlu1 %969 }
 0x3b7   : > { %v971_v14 = vsub.f32 %v963_v54, %v970_v13 }
 0x3b9   : > { %v972_v15 = vmul.f32 1.442695, %v971_v14 }
 0x3bb   : > { %1814 = vpow2.f32 %v972_v15 }
 0x3be   : > { %v1087_v16 = vpop.xlane.xlu0 %1086 }
 0x3bf   : > { %v1088_v17 = vsub.f32 %v1080_v60, %v1087_v16 }
 0x3c1   : > { %v1089_v18 = vmul.f32 1.442695, %v1088_v17 }
 0x3c3   : > { %1816 = vpow2.f32 %v1089_v18 }
 0x3c5   : > { %v1815_v19 = vpop.eup %1814 }
 0x3c6   : > { %v1203_v20 = vpop.xlane.xlu0 %1202  ;;  %v974_v21 = vsel %vm809_vm2, %v1815_v19, 0.0 }
 0x3c7   : > { %v1204_v22 = vsub.f32 %v1196_v3, %v1203_v20  ;;  %975 = vadd.xlane.f32.xlu0 %v974_v21 }
 0x3c9   : > { %v1205_v23 = vmul.f32 1.442695, %v1204_v22 }
 0x3cb   : > { %1818 = vpow2.f32 %v1205_v23 }
 0x3cd   : > { %v1817_v24 = vpop.eup %1816 }
 0x3ce   : > { %v1091_v25 = vsel %vm809_vm2, %v1817_v24, 0.0 }
 0x3cf   : > { %1092 = vadd.xlane.f32.xlu1 %v1091_v25 }
 0x3d5   : > { %v1819_v26 = vpop.eup %1818 }
 0x3d6   : > { %v1207_v27 = vsel %vm809_vm2, %v1819_v26, 0.0 }
 0x3d7   : > { %1208 = vadd.xlane.f32.xlu0 %v1207_v27 }
 0x3e0   : > { %1213 = vrot.lane.b32.xlu1 %v808_v50, %s2145_s30  ;;  %s1337_s30 = scalar_lea.sflag [#allocation5], %s2513_s24 }
 0x3e2   : > { %v864_v28 = vpop.xlane.xlu1 %863 }
 0x3e3   : > { %1820 = vrcp.f32 %v864_v28 }
 0x3e6   : > { %v982_v30 = vpop.permute.xlu1 %981 }
 0x3e7   : > { %v987_v33 = vsel %vm871_vm3, %v982_v30, 0 }
 0x3ed   : > { %v1821_v29 = vpop.eup %1820  ;;  %1097 = vrot.lane.b32.xlu0 %v808_v50, %s2143_s15  ;;  %s2781_s15 = sld [smem:[#allocation36_spill]] }
 0x3ee   : > { %v866_v31 = vmul.f32 %v1821_v29, %v1813_v11 }
 0x3f0   : > { %v867_v32 = vpack.c.bf16 %v866_v31, %v866_v31 }
 0x3f2   : > { %1639 = vmatmul.mubr.msk.bf16.vlgmr.msra.gmra.mrb[8].mxu0 %vm809_vm2, %v867_v32 }
 0x3f3   : > { %1649 = vmatpush3.bf16.msra.mxu0 %v987_v33  ;;  %1650 = vmatprep.mubr.msk.bf16.mxu0 %vm2142_vm0, %v2141_v0  ;;  %s2655_s23 = scalar_lea.hbm %s2781_s15, %s1575_s16 }
 0x3f4   : > { %1660 = vmatprep.subr.bf16.mxu0 %v2141_v0 }
 0x454   : > { %v976_v34 = vpop.xlane.xlu0 %975 }
 0x455   : > { %1822 = vrcp.f32 %v976_v34 }
 0x45c   : > { %v1093_v35 = vpop.xlane.xlu1 %1092 }
 0x45d   : > { %1824 = vrcp.f32 %v1093_v35 }
 0x45f   : > { %v1823_v36 = vpop.eup %1822 }
 0x460   : > { %v978_v37 = vmul.f32 %v1823_v36, %v1815_v19  ;;  %v1214_v44 = vpop.permute.xlu1 %1213 }
 0x461   : > { %v1219_v46 = vsel %vm871_vm3, %v1214_v44, 0 }
 0x462   : > { %v979_v38 = vpack.c.bf16 %v978_v37, %v978_v37 }
 0x464   : > { %v1209_v39 = vpop.xlane.xlu0 %1208  ;;  %1651 = vmatmul.mubr.msk.bf16.vlgmr.msra.gmra.mrb[12].mxu0 %vm809_vm2, %v979_v38 }
 0x465   : > { %1826 = vrcp.f32 %v1209_v39  ;;  %1662 = vmatprep.mubr.msk.bf16.mxu0 %vm2142_vm0, %v2141_v0 }
 0x467   : > { %v1825_v40 = vpop.eup %1824 }
 0x468   : > { %v1095_v41 = vmul.f32 %v1825_v40, %v1817_v24  ;;  %v1098_v42 = vpop.permute.xlu0 %1097 }
 0x469   : > { %v1103_v43 = vsel %vm871_vm3, %v1098_v42, 0 }
 0x46a   : > { %1661 = vmatpush3.bf16.msra.mxu0 %v1103_v43  ;;  %v1096_v45 = vpack.c.bf16 %v1095_v41, %v1095_v41 }
 0x46b   : > { %1672 = vmatprep.subr.bf16.mxu0 %v2141_v0 }
 0x46d   : > { %1663 = vmatmul.mubr.msk.bf16.vlgmr.msra.gmra.mrb[16].mxu0 %vm809_vm2, %v1096_v45 }
 0x46e   : > { %1673 = vmatpush3.bf16.msra.mxu0 %v1219_v46  ;;  %1674 = vmatprep.mubr.msk.bf16.mxu0 %vm2142_vm0, %v2141_v0 }
 0x46f   : > { %v1827_v47 = vpop.eup %1826 }
 0x470   : > { %v1211_v48 = vmul.f32 %v1827_v47, %v1819_v26 }
 0x472   : > { %v1212_v49 = vpack.c.bf16 %v1211_v48, %v1211_v48 }
 0x475   : > { %1675 = vmatmul.mubr.msk.bf16.vlgmr.msra.gmra.mrb[20].mxu0 %vm809_vm2, %v1212_v49 }
 0x4c5   : > { %v909_v50 = vpop.f32.mrb[8].mxu0 }
 0x4c6   : > { %915 = vst.msk [vmem:[#allocation2] sm:$0xff] %vm809_vm2, %v909_v50  ;;  %v1640_v51 = vpop.f32.mrb[9].mxu0 }
 0x4c7   : > { %v912_v52 = vpop.f32.mrb[10].mxu0 }
 0x4c8   : > { %v1641_v53 = vpop.f32.mrb[11].mxu0 }
 0x537   : > { %v1023_v54 = vpop.f32.mrb[12].mxu0 }
 0x538   : > { %1030 = vrot.lane.b32.xlu1 %v1023_v54, %s2146_s11  ;;  %v1652_v55 = vpop.f32.mrb[13].mxu0  ;;  %s2149_s11 = smov [#allocation15]  }
 0x539   : > { %v1026_v56 = vpop.f32.mrb[14].mxu0  ;;  %s2036_s13 = sshll.u32 %s2149_s11, 4  ;;  %s2037_s13 = int_to_ptr.vmem [resolvable:$false] %s2036_s13 }
 0x53a   : > { %v1653_v57 = vpop.f32.mrb[15].mxu0  ;;  %s2038_s14 = scalar_lea.vmem %s2037_s13, 256  ;;  %p2039_p11 = scmp.lt.s32.totalorder %s2657_s10, %s2037_s13 }
 0x53b   : > { %p2040_p9 = scmp.lt.s32.totalorder %s2038_s14, %s2032_s21 }
 0x53d   : > { %p2041_p5 = por %p2040_p9, %p2039_p11 }
 0x53f   : > { %p2042_p7 = pnand %p2041_p5, %p2035_p0 }
 0x540   : > { %v1139_v60 = vpop.f32.mrb[16].mxu0 }
 0x541   : > { %1146 = vrot.lane.b32.xlu0 %v1139_v60, %s2147_s7  ;;  %v1664_v61 = vpop.f32.mrb[17].mxu0 }
 0x542   : > { %v1142_v62 = vpop.f32.mrb[18].mxu0 }
 0x543   : > { %v1665_v63 = vpop.f32.mrb[19].mxu0 }
 0x548   : > { %v1255_v1 = vpop.f32.mrb[20].mxu0 }
 0x549   : > { %1262 = vrot.lane.b32.xlu1 %v1255_v1, %s2148_s12  ;;  %v1676_v2 = vpop.f32.mrb[21].mxu0 }
 0x54a   : > { %v1258_v3 = vpop.f32.mrb[22].mxu0 }
 0x54b   : > { %v1677_v4 = vpop.f32.mrb[23].mxu0 }
 0x5aa   : > { %v1031_v5 = vpop.permute.xlu1 %1030 }
 0x5ab   : > { %1034 = vst.msk [vmem:[#allocation2] sm:$0xff] %vm1033_vm4, %v1031_v5 }
 0x5b3   : > { %v1147_v0 = vpop.permute.xlu0 %1146 }
 0x5b4   : > { %1150 = vst.msk [vmem:[#allocation2] sm:$0xff] %vm1149_vm5, %v1147_v0 }
 0x5bb   : > { %v1263_v6 = vpop.permute.xlu1 %1262 }
 0x5bc   : > { %1266 = vst.msk [vmem:[#allocation2] sm:$0xff] %vm1265_vm6, %v1263_v6 }
 0x5c3   : > { %v1267_v7 = vld [vmem:[#allocation2] sm:$0xff] }
 0x5c4   : > { %v1268_v8 = vpack.c.bf16 %v1267_v7, %v1267_v7 }
 0x5c6   : > { %1683 = vmatmul.mubr.msk.bf16.vlgmr.msra.gmra.mrb[20].mxu1 %vm630_vm1, %v1268_v8 }
 0x699   : > { %v1329_v10 = vpop.f32.mrb[20].mxu1 }
 0x69a   : > { %v1330_v11 = vadd.f32 %v1570_v9, %v1329_v10  ;;  %v1684_v12 = vpop.f32.mrb[21].mxu1 }
 0x69b   : > { %v1332_v13 = vpop.f32.mrb[22].mxu1 }
 0x69c   : > { %v1685_v14 = vpop.f32.mrb[23].mxu1  ;;  %1335 = vst.msk [vmem:[%s597_s4] sm:$0xff] %vm630_vm1, %v1330_v11 }
 0x69d   : > { %2045 = shalt.err (!%p2042_p7)
}
 0x69e   : > { %s2046_s24 = scalar_lea.hbm %s2655_s23, 128  ;;  %s2050_s7 = scalar_lea.hbm %s2781_s15, 256 }
 0x69f   : > { %p2047_p10 = scmp.ne.s32.totalorder %s2655_s23, %s2046_s24  ;;  %p2051_p4 = scmp.lt.u32.totalorder %s2655_s23, %s2781_s15 }
 0x6a0   : > { %p2052_p2 = scmp.lt.u32.totalorder %s2050_s7, %s2046_s24  ;;  %p2054_p13 = scmp.lt.u32.totalorder %s2046_s24, %s2655_s23 }
 0x6a1   : > { %p2048_p6 = pnand %p2047_p10, %p2782_p12 }
 0x6a2   : > { %p2053_p8 = por %p2052_p2, %p2051_p4 }
 0x6a3   : > { %p2049_p1 = pneg %p2048_p6 }
 0x6a4   : > { %p2055_p3 = por %p2054_p13, %p2053_p8 }
 0x6a6   : > { %p2056_p0 = pnand %p2055_p3, %p2049_p1 }
 0x6a8   : > { %2059 = shalt.err (!%p2056_p0)
}
 0x6a9   : > { %1706 = dma.vmem_to_hbm [thread:$0]  (%p2782_p12), %s2657_s10, 128, %s2655_s23, %s1337_s30  }
 0x6aa PF: > { %s2783_s20 = sld [smem:[#allocation22_spill]]  ;;  %s2784_s27 = sld [smem:[#allocation25_spill]] }
 0x6ab   : > { %p2786_p9 = scmp.ge.s32.totalorder %s2130_s26, 2 }
 0x6b0   : > { %s1363_s8 = sand.u32 1, %s2783_s20   ;;  %p2785_p11 = scmp.ne.s32.totalorder %s2784_s27, 0 }
 0x6b1   : > { %s1364_s16 = scalar_lea.sflag [#allocation5], %s1363_s8 }
 0x6b2   : > { %p1732_p5 = pnand %p2786_p9, %p2785_p11 }
 0x6b4   : > { %2105 = dma.done.wait (!%p1732_p5), %s1364_s16, 128  }
 0x6b5   : > { %2107 = vsyncadd (!%p1732_p5), %s1364_s16, 4294967168  ;;  %s35_s26 = sadd.s32 1, %s2130_s26   ;;  %s2787_s4 = sld [smem:[#allocation23_spill]] }
 0x6b6   : > { %p32_p7 = scmp.ge.s32.totalorder %s35_s26, 4   ;;  %s2788_s23 = sld [smem:[#allocation28_spill]] }
 0x6b7   : > { %s2789_s18 = sld [smem:[#allocation26_spill]]  ;;  %s2790_s21 = smov %s2114_s22 }
 0x6b8   : > { %s2792_s24 = smov %s2126_s25  ;;  %34 = sbr.rel (!%p32_p7) target bundleno = 20 (0x14), region = 162 }
 0x6bb   : > { %s2791_s22 = smov %s2787_s4 }
 0x6bd   : > { %s2793_s25 = smov %s2789_s18 }
 0x6bf   :  { %1369 = vsyncpa [#allocation4], 1 }
 0x6c0   :  { %1371 = vsyncpa [#allocation4 + $0x1], 1 }
 0x6c1   :  { %1372 = vsyncpa [#allocation7], 1 }
 0x6c2   :  { %1374 = vsyncpa [#allocation7 + $0x1], 1 }
 0x6c3   :  { %1375 = vsyncpa [#allocation10], 1 }
 0x6c4   :  { %1377 = vsyncpa [#allocation10 + $0x1], 1 }
 0x6c5   :  { %1378 = vsyncpa [#allocation13], 1 }
 0x6c6   :  { %1379 = vsyncpa [#allocation5], 1 }
 0x6c7   :  { %1381 = vsyncpa [#allocation5 + $0x1], 1 }

</bundles_post_ra>
